<compile_context>
chip_gen: v7x
topology: tpu7x:2x2x1
jax: 0.10.0
libtpu: 0.0.40
codegen_flags: <defaults>
</compile_context>

<pallas_src>
import jax
import jax.numpy as jnp
from jax.experimental import pallas as pl
from jax.experimental.pallas import tpu as pltpu

KH = KW = 3
CIN, COUT = 3, 6
K_AUG = CIN * KH * KW + 1   # 27 conv taps + 1 bias row = 28
TM = 512                    # lane tile along the flattened (N*H_out*W_out) axis


def conv_matmul_kernel(w_ref, p_ref, o_ref):
    # w_ref: (COUT, K_AUG)   p_ref: (K_AUG, TM)   o_ref: (COUT, TM)
    o_ref[...] = jax.lax.dot_general(
        w_ref[...], p_ref[...],
        dimension_numbers=(((1,), (0,)), ((), ())),
        preferred_element_type=jnp.float32,
    ).astype(o_ref.dtype)


def conv2d_pallas(x_nchw, weight, bias):
    """x_nchw: (N, 3, H, W) f32; weight: (6, 3, 3, 3) OIHW; bias: (6,). Returns NCHW."""
    n, cin, h, w = x_nchw.shape
    assert cin == CIN
    h_out, w_out = h - KH + 1, w - KW + 1
    m = n * h_out * w_out
    m_pad = ((m + TM - 1) // TM) * TM

    # ---- wrapper-side layout plumbing (im2col + bias folding), all glue ----
    cols = []
    for kh in range(KH):
        for kw in range(KW):
            cols.append(x_nchw[:, :, kh:kh + h_out, kw:kw + w_out])  # (N,CIN,Ho,Wo)
    # (N, CIN, KH*KW, H_out, W_out); tap index = kh*KW + kw matches OIHW flatten order
    patches = jnp.stack(cols, axis=2)
    patches = patches.reshape(n, CIN * KH * KW, h_out * w_out)
    patches = jnp.transpose(patches, (1, 0, 2)).reshape(CIN * KH * KW, m)
    patches = jnp.pad(patches, ((0, 0), (0, m_pad - m)))
    p_aug = jnp.concatenate(
        [patches, jnp.ones((1, m_pad), patches.dtype)], axis=0)        # (28, M_pad)

    w_aug = jnp.concatenate(
        [weight.reshape(COUT, CIN * KH * KW), bias[:, None]], axis=1)  # (6, 28)

    out_flat = pl.pallas_call(
        conv_matmul_kernel,
        out_shape=jax.ShapeDtypeStruct((COUT, m_pad), x_nchw.dtype),
        grid=(m_pad // TM,),
        in_specs=[
            pl.BlockSpec((COUT, K_AUG), lambda i: (0, 0)),   # weights resident
            pl.BlockSpec((K_AUG, TM), lambda i: (0, i)),     # lane-dense patch tile
        ],
        out_specs=pl.BlockSpec((COUT, TM), lambda i: (0, i)),
        compiler_params=pltpu.CompilerParams(
            dimension_semantics=("parallel",),
            vmem_limit_bytes=16 * 1024 * 1024,
        ),
    )(w_aug, p_aug)

    # (COUT, M_pad) -> drop padding -> (N, COUT, H_out, W_out) to match PyTorch NCHW
    out = out_flat[:, :m].reshape(COUT, n, h_out, w_out)
    return jnp.transpose(out, (1, 0, 2, 3))


if __name__ == "__main__":
    key = jax.random.PRNGKey(0)
    kx, kw_, kb = jax.random.split(key, 3)

    # Small shapes consistent with Conv2d(3 -> 6, k=3): batch=2, 3x16x16 input.
    x = jax.random.normal(kx, (2, 3, 16, 16), dtype=jnp.float32)

    # Deterministic parameter init mirroring PyTorch's default uniform(-1/sqrt(fan_in), +)
    fan_in = CIN * KH * KW
    bound = 1.0 / (fan_in ** 0.5)
    weight = jax.random.uniform(kw_, (COUT, CIN, KH, KW), jnp.float32, -bound, bound)
    bias = jax.random.uniform(kb, (COUT,), jnp.float32, -bound, bound)

    out = conv2d_pallas(x, weight, bias)
    jax.block_until_ready(out)

    # Reference check against XLA's convolution (NCHW, OIHW, valid padding).
    ref = jax.lax.conv_general_dilated(
        x, weight, window_strides=(1, 1), padding="VALID",
        dimension_numbers=("NCHW", "OIHW", "NCHW"),
    ) + bias[None, :, None, None]

    assert out.shape == (2, 6, 14, 14), out.shape
    assert jnp.allclose(out, ref, atol=1e-5, rtol=1e-5)

    print("KERNEL_OK")
</pallas_src>

<mosaic_0001>
module attributes {stable_mosaic.version = 11 : i64} {
  func.func @conv_matmul_kernel(%arg0: i32, %arg1: memref<6x28xf32, #tpu.memory_space<vmem>>, %arg2: memref<28x512xf32, #tpu.memory_space<vmem>>, %arg3: memref<6x512xf32, #tpu.memory_space<vmem>>) attributes {dimension_semantics = [#tpu.dimension_semantics<parallel>], iteration_bounds = array<i64: 1>, scalar_prefetch = 0 : i64, scratch_operands = 0 : i64, tpu.core_type = #tpu.core_type<tc>, window_params = [{pipeline_mode = #tpu.pipeline_mode<synchronous>, transform_indices = @transform_0, window_bounds = array<i64: 6, 28>}, {transform_indices = @transform_1, window_bounds = array<i64: 28, 512>}, {transform_indices = @transform_2, window_bounds = array<i64: 6, 512>}]} {
    %c0 = arith.constant 0 : index
    %c0_0 = arith.constant 0 : index
    %0 = vector.load %arg1[%c0, %c0_0] : memref<6x28xf32, #tpu.memory_space<vmem>>, vector<6x28xf32>
    %c0_1 = arith.constant 0 : index
    %c0_2 = arith.constant 0 : index
    %1 = vector.load %arg2[%c0_1, %c0_2] : memref<28x512xf32, #tpu.memory_space<vmem>>, vector<28x512xf32>
    %cst = arith.constant dense<0.000000e+00> : vector<6x512xf32>
    %2 = tpu.matmul %0, %1, %cst {dimension_numbers = #tpu.dot_dimension_numbers<[1], [0], [0], [1], [0, 0, 1, 1], [], []>} : vector<6x28xf32>, vector<28x512xf32>, vector<6x512xf32> -> vector<6x512xf32>
    %c0_3 = arith.constant 0 : index
    %c0_4 = arith.constant 0 : index
    %3 = vector.load %arg3[%c0_3, %c0_4] : memref<6x512xf32, #tpu.memory_space<vmem>>, vector<6x512xf32>
    tpu.vector_store %arg3[%c0_3, %c0_4], %2 {strides = array<i32>} : memref<6x512xf32, #tpu.memory_space<vmem>>, vector<6x512xf32>,
    return
  }
  func.func @transform_0(%arg0: i32) -> (i32, i32) {
    %c0_i32 = arith.constant 0 : i32
    %c0_i32_0 = arith.constant 0 : i32
    %c0_i32_1 = arith.constant 0 : i32
    return %c0_i32, %c0_i32_0 : i32, i32
  }
  func.func @transform_1(%arg0: i32) -> (i32, i32) {
    %c0_i32 = arith.constant 0 : i32
    %c0_i32_0 = arith.constant 0 : i32
    return %c0_i32, %arg0 : i32, i32
  }
  func.func @transform_2(%arg0: i32) -> (i32, i32) {
    %c0_i32 = arith.constant 0 : i32
    %c0_i32_0 = arith.constant 0 : i32
    return %c0_i32, %arg0 : i32, i32
  }
}

</mosaic_0001>

<bundles_post_ra>
// kernel: tpu_custom_call.1
= control target key start
LH: loop header
LB: loop body
LE: loop exit
PB: predicated region body
PF: predicated region fallthrough
CT: control target
= control target key end

     0   :  { %7 = vsyncpa [#allocation3], 0  ;;  %s416_s0 = inlined_call_operand.hbm [shape: f32[6,28], index: 0, kind: input, shape index: {}]   ;;  %s417_s1 = inlined_call_operand.hbm [shape: f32[28,512], index: 1, kind: input, shape index: {}]   ;;  %s418_s2 = inlined_call_operand.hbm [shape: f32[6,512], index: 2, kind: output, shape index: {}]  }
   0x1   :  { %8 = vsyncpa [#allocation6], 0 }
   0x2   :  { %9 = vsyncpa [#allocation4], 0  ;;  %s339_s9 = smov [#allocation2]   ;;  %s340_s11 = smov [#allocation5]  }
   0x3   :  { %s16_s10 = sshll.u32 %s339_s9, 4  ;;  %s25_s12 = sshll.u32 %s340_s11, 4  ;;  %s17_s10 = int_to_ptr.vmem [resolvable:$true] %s16_s10  ;;  %s361_s12 = int_to_ptr.vmem [resolvable:$true] %s25_s12 }
   0x4   :  { %s267_s15 = scalar_lea.hbm %s416_s0, 128 }
   0x5   :  { %p268_p0 = scmp.ne.s32.totalorder %s416_s0, %s267_s15  ;;  %p271_p1 = scmp.lt.u32.totalorder %s267_s15, %s416_s0 }
   0x7   :  { %p273_p2 = pnand %p271_p1, %p268_p0 }
   0x9   :  { %276 = shalt.err (!%p273_p2)
}
   0xa   :  { %s277_s20 = scalar_lea.vmem %s17_s10, 128  ;;  %p282_p4 = scmp.lt.s32.totalorder %s17_s10, %s17_s10 }
   0xb   :  { %p278_p3 = scmp.ne.s32.totalorder %s17_s10, %s277_s20  ;;  %p283_p5 = scmp.lt.s32.totalorder %s277_s20, %s277_s20 }
   0xd   :  { %p284_p6 = por %p283_p5, %p282_p4 }
   0xf   :  { %p285_p7 = pnand %p284_p6, %p278_p3 }
  0x11   :  { %288 = shalt.err (!%p285_p7)
}
  0x12   :  { %19 = dma.hbm_to_vmem [thread:$0]  %s416_s0, 128, %s17_s10, [#allocation3]  }
  0x13   :  { %s289_s25 = scalar_lea.hbm %s417_s1, 2048 }
  0x14   :  { %p290_p8 = scmp.ne.s32.totalorder %s417_s1, %s289_s25  ;;  %p293_p9 = scmp.lt.u32.totalorder %s289_s25, %s417_s1 }
  0x16   :  { %p295_p10 = pnand %p293_p9, %p290_p8 }
  0x18   :  { %298 = shalt.err (!%p295_p10)
}
  0x19   :  { %s299_s30 = scalar_lea.vmem %s361_s12, 2048  ;;  %p304_p12 = scmp.lt.s32.totalorder %s361_s12, %s361_s12 }
  0x1a   :  { %p300_p11 = scmp.ne.s32.totalorder %s361_s12, %s299_s30  ;;  %p305_p13 = scmp.lt.s32.totalorder %s299_s30, %s299_s30 }
  0x1c   :  { %p306_p0 = por %p305_p13, %p304_p12 }
  0x1e   :  { %p307_p1 = pnand %p306_p0, %p300_p11 }
  0x20   :  { %310 = shalt.err (!%p307_p1)
}
  0x21   :  { %s341_s0 = smov 512   ;;  %s342_s3 = smov 32  }
  0x22   :  { %31 = dma.hbm_to_vmem [thread:$0]  %s417_s1, 2048, %s361_s12, [#allocation6], %s341_s0, %s341_s0, %s342_s3  }
  0x23   :  { %333 = dma.done.wait [#allocation3], 128  }
  0x24   :  { %334 = vsyncadd [#allocation3], 4294967168 }
  0x25   :  { %335 = dma.done.wait [#allocation6], 2048  }
  0x26   :  { %336 = vsyncadd [#allocation6], 4294965248  ;;  %v343_v0 = vmov 0.0   ;;  %vm59_vm0 = vcmask 1043456   ;;  %vm344_vm1 = vmmov 1   ;;  %v40_v2 = vld [vmem:[#allocation5 + $0x8] sm:$0xff] }
  0x27   :  { %136 = vmatprep.mubr.f32.mxu0 %v343_v0  ;;  %207 = vmatprep.mubr.f32.mxu1 %v343_v0  ;;  %vm392_vm2 = vmpackc.low %vm59_vm0, %vm344_vm1  ;;  %v44_v3 = vld [vmem:[#allocation5 + $0x28] sm:$0xff]  ;;  %v42_v4 = vld [vmem:[#allocation5 + $0x18] sm:$0xff]  ;;  %vm55_vm3 = vcmask 228352   ;;  %s345_s1 = smov [#allocation7]  }
  0x28   :  { %v240_v5 = vpack.c.bf16 %v44_v3, %v40_v2  ;;  %v46_v6 = vld [vmem:[#allocation5 + $0x38] sm:$0xff]  ;;  %v39_v7 = vld [vmem:[#allocation5] sm:$0xff]  ;;  %v41_v11 = vld [vmem:[#allocation5 + $0x10] sm:$0xff]  ;;  %s224_s6 = sshll.u32 %s345_s1, 4  ;;  %s225_s6 = int_to_ptr.vmem [resolvable:$true] %s224_s6 }
  0x29   :  { %v43_v8 = vld [vmem:[#allocation5 + $0x20] sm:$0xff]  ;;  %v250_v9 = vpack.c.bf16 %v46_v6, %v42_v4  ;;  %v45_v12 = vld [vmem:[#allocation5 + $0x30] sm:$0xff]  ;;  %v48_v13 = vld [vmem:[#allocation5 + $0x48] sm:$0xff]  ;;  %s311_s7 = scalar_lea.vmem %s225_s6, 512  ;;  %p316_p3 = scmp.lt.s32.totalorder %s225_s6, %s225_s6 }
  0x2a   :  { %v242_v10 = vpack.c.bf16 %v43_v8, %v39_v7  ;;  %241 = vmatprep.subr.bf16.mxu0 %v240_v5  ;;  %v252_v14 = vpack.c.bf16 %v45_v12, %v41_v11  ;;  %v52_v15 = vld [vmem:[#allocation5 + $0x68] sm:$0xf]  ;;  %v50_v16 = vld [vmem:[#allocation5 + $0x58] sm:$0xff]  ;;  %v47_v20 = vld [vmem:[#allocation5 + $0x40] sm:$0xff]  ;;  %p312_p2 = scmp.ne.s32.totalorder %s225_s6, %s311_s7  ;;  %p317_p4 = scmp.lt.s32.totalorder %s311_s7, %s311_s7 }
  0x2b   :  { %v54_v17 = vld [vmem:[#allocation5 + $0x78] sm:$0xf]  ;;  %251 = vmatprep.subr.bf16.mxu1 %v250_v9  ;;  %v244_v18 = vpack.c.bf16 %v52_v15, %v48_v13  ;;  %v51_v21 = vld [vmem:[#allocation5 + $0x60] sm:$0xf]  ;;  %v49_v22 = vld [vmem:[#allocation5 + $0x50] sm:$0xff] }
  0x2c   :  { %243 = vmatpush1.bf16.msra.mxu0 %v242_v10  ;;  %v254_v19 = vpack.c.bf16 %v54_v17, %v50_v16  ;;  %253 = vmatpush1.bf16.msra.mxu1 %v252_v14  ;;  %v247_v23 = vpack.c.bf16 %v51_v21, %v47_v20  ;;  %v53_v24 = vld [vmem:[#allocation5 + $0x70] sm:$0xf]  ;;  %v38_v26 = vld [vmem:[#allocation2] sm:$0x3f]  ;;  %p318_p5 = por %p317_p4, %p316_p3 }
  0x2d   :  { %246 = vmatprep.subr.msk.bf16.mxu0 %vm392_vm2, %v244_v18  ;;  %v257_v25 = vpack.c.bf16 %v53_v24, %v49_v22 }
  0x2e   :  { %256 = vmatprep.subr.msk.bf16.mxu1 %vm392_vm2, %v254_v19  ;;  %p319_p6 = pnand %p318_p5, %p312_p2 }
  0x30   :  { %249 = vmatpush1.bf16.msk.msra.mxu0 %vm392_vm2, %v247_v23  ;;  %259 = vmatpush1.bf16.msk.msra.mxu1 %vm392_vm2, %v257_v25 }
  0x33   :  { %236 = vmatmul.mubr.msk.f32.vlgmr.msra.gmra.mrb[0].mxu0 %vm55_vm3, %v38_v26  ;;  %239 = vmatmul.mubr.msk.f32.vlgmr.msra.gmra.mrb[0].mxu1 %vm55_vm3, %v38_v26 }
 0x106   :  { %v138_v27 = vpop.f32.mrb[0].mxu0  ;;  %v209_v28 = vpop.f32.mrb[0].mxu1 }
 0x107   :  { %214 = vst [vmem:[#allocation7] sm:$0x3f] %v138_v27  ;;  %v140_v29 = vpop.f32.mrb[1].mxu0  ;;  %216 = vst [vmem:[#allocation7 + $0x10] sm:$0x3f] %v209_v28  ;;  %v211_v30 = vpop.f32.mrb[1].mxu1 }
 0x108   :  { %215 = vst [vmem:[#allocation7 + $0x8] sm:$0x3f] %v140_v29  ;;  %217 = vst [vmem:[#allocation7 + $0x18] sm:$0x3f] %v211_v30 }
 0x109   :  { %322 = shalt.err (!%p319_p6)
}
 0x10a   :  { %s323_s10 = scalar_lea.hbm %s418_s2, 512 }
 0x10b   :  { %p324_p7 = scmp.ne.s32.totalorder %s418_s2, %s323_s10  ;;  %p327_p8 = scmp.lt.u32.totalorder %s323_s10, %s418_s2 }
 0x10d   :  { %p329_p9 = pnand %p327_p8, %p324_p7 }
 0x10f   :  { %332 = shalt.err (!%p329_p9)
}
 0x110   :  { %227 = dma.vmem_to_hbm [thread:$0]  %s225_s6, 512, %s418_s2, [#allocation4]  }
 0x111   :  { %337 = dma.done.wait [#allocation4], 512  }
 0x112   :  { %338 = vsyncadd [#allocation4], 4294966784 }
 0x113   :  { %231 = vsyncpa [#allocation3], 1 }
 0x114   :  { %232 = vsyncpa [#allocation6], 1 }
 0x115   :  { %233 = vsyncpa [#allocation4], 1 }

</bundles_post_ra>
